<compile_context>
chip_gen: v6e
topology: v6e:2x2x1
jax: 0.10.0
libtpu: 0.0.40
codegen_flags: <defaults>
</compile_context>

<pallas_src>
import jax
import jax.numpy as jnp
from jax.experimental import pallas as pl
from jax.experimental.pallas import tpu as pltpu


def _mlp_kernel(x_ref, w1_ref, b1_ref, w2_ref, b2_ref, w3_ref, b3_ref,
                w4_ref, b4_ref, o_ref):
    """Linear-ReLU x3 -> Linear on one row tile. Params resident in VMEM."""
    x = x_ref[...].astype(jnp.float32)

    h = jnp.dot(x, w1_ref[...], preferred_element_type=jnp.float32) + b1_ref[...]
    h = jnp.maximum(h, 0.0)

    h = jnp.dot(h, w2_ref[...], preferred_element_type=jnp.float32) + b2_ref[...]
    h = jnp.maximum(h, 0.0)

    h = jnp.dot(h, w3_ref[...], preferred_element_type=jnp.float32) + b3_ref[...]
    h = jnp.maximum(h, 0.0)

    h = jnp.dot(h, w4_ref[...], preferred_element_type=jnp.float32) + b4_ref[...]

    o_ref[...] = h.astype(o_ref.dtype)


def _cdiv(n, m):
    return (n + m - 1) // m


def _round_up(n, m):
    return _cdiv(n, m) * m


def _mlp_forward(rows, params, *, tile_rows=2048):
    """Run one 4-layer MLP over `rows` ([N, in_dim]) with a row-tiled grid."""
    n_rows, in_dim = rows.shape
    feat_dim = params[6].shape[1]  # w4: [64, feature_dim]
    out_dtype = rows.dtype

    # Large tile for throughput; shrink for small inputs but keep >= 2 grid
    # steps whenever possible so both v7x TensorCores get work.  Tile must be
    # a multiple of 8 (sublane).
    tile = max(8, min(int(tile_rows), _round_up(_cdiv(n_rows, 2), 8)))
    grid = (_cdiv(n_rows, tile),)

    itemsize = jnp.dtype(out_dtype).itemsize
    flops = 2 * n_rows * (in_dim * 16 + 16 * 32 + 32 * 64 + 64 * feat_dim)
    bytes_accessed = (itemsize * n_rows * (in_dim + feat_dim)
                      + sum(4 * p.size for p in params))
    cost = pl.CostEstimate(flops=flops, transcendentals=0,
                           bytes_accessed=bytes_accessed)

    row_spec = pl.BlockSpec((tile, in_dim), lambda i: (i, 0))
    param_specs = [pl.BlockSpec(p.shape, lambda i: (0, 0)) for p in params]

    return pl.pallas_call(
        _mlp_kernel,
        out_shape=jax.ShapeDtypeStruct((n_rows, feat_dim), out_dtype),
        grid=grid,
        in_specs=[row_spec] + param_specs,
        out_specs=pl.BlockSpec((tile, feat_dim), lambda i: (i, 0)),
        compiler_params=pltpu.CompilerParams(
            dimension_semantics=("parallel",)),
        cost_estimate=cost,
    )(rows, *params)


def graph_encoder_forward(x, edge_index, edge_attr, edge_params, node_params,
                          *, tile_rows=2048, io_dtype=None):
    """Fused MetaLayer(EdgeEncoderModel, NodeEncoderModel) forward.

    Returns (x_out, edge_attr_out, u_out) with u_out=None, matching
    torch_geometric.nn.models.MetaLayer with no global model.
    `io_dtype=jnp.bfloat16` halves HBM row traffic (recommended on v5e/v6e);
    accumulation stays f32 either way.
    """
    del edge_index  # both encoders ignore graph structure
    if io_dtype is not None:
        x = x.astype(io_dtype)
        edge_attr = edge_attr.astype(io_dtype)

    edge_out = _mlp_forward(edge_attr, edge_params, tile_rows=tile_rows)
    x_out = _mlp_forward(x, node_params, tile_rows=tile_rows)
    return x_out, edge_out, None


def init_mlp_params(key, input_dim, feature_dim):
    """Deterministic init of Linear(in,16)->16->32->64->feature_dim params.

    Weights stored already-transposed as [in, out] (PyTorch Linear stores
    [out, in] and computes x @ W^T; the transpose is folded in here).
    Biases stored as [1, out] for TPU-friendly broadcasting.
    """
    dims = [input_dim, 16, 32, 64, feature_dim]
    params = []
    for i in range(4):
        key, kw, kb = jax.random.split(key, 3)
        bound = 1.0 / jnp.sqrt(dims[i])
        w = jax.random.uniform(kw, (dims[i], dims[i + 1]), jnp.float32,
                               -bound, bound)
        b = jax.random.uniform(kb, (1, dims[i + 1]), jnp.float32,
                               -bound, bound)
        params += [w, b]
    return tuple(params)


def _ref_mlp(x, params):
    w1, b1, w2, b2, w3, b3, w4, b4 = params
    h = jax.nn.relu(x @ w1 + b1)
    h = jax.nn.relu(h @ w2 + b2)
    h = jax.nn.relu(h @ w3 + b3)
    return h @ w4 + b4


if __name__ == "__main__":
    input_dim = 8
    feature_dim = 32

    key = jax.random.PRNGKey(0)
    k_x, k_e, k_idx, k_pe, k_pn, k_x2, k_e2 = jax.random.split(key, 7)

    edge_params = init_mlp_params(k_pe, input_dim, feature_dim)
    node_params = init_mlp_params(k_pn, input_dim, feature_dim)

    # Small graph (adaptive small-tile path, grid kept at 2 steps).
    num_nodes, num_edges = 16, 32
    x = jax.random.normal(k_x, (num_nodes, input_dim), jnp.float32)
    edge_attr = jax.random.normal(k_e, (num_edges, input_dim), jnp.float32)
    edge_index = jax.random.randint(k_idx, (2, num_edges), 0, num_nodes,
                                    jnp.int32)

    x_out, edge_out, u_out = graph_encoder_forward(
        x, edge_index, edge_attr, edge_params, node_params)
    jax.block_until_ready((x_out, edge_out))

    assert x_out.shape == (num_nodes, feature_dim)
    assert edge_out.shape == (num_edges, feature_dim)
    assert u_out is None
    assert jnp.allclose(x_out, _ref_mlp(x, node_params), atol=1e-5, rtol=1e-5)
    assert jnp.allclose(edge_out, _ref_mlp(edge_attr, edge_params),
                        atol=1e-5, rtol=1e-5)

    # Larger graph whose row counts do NOT divide the tile: exercises the
    # masked partial last block (no wrapper padding anywhere).
    num_nodes2, num_edges2 = 100, 300
    x2 = jax.random.normal(k_x2, (num_nodes2, input_dim), jnp.float32)
    e2 = jax.random.normal(k_e2, (num_edges2, input_dim), jnp.float32)
    x2_out, e2_out, _ = graph_encoder_forward(
        x2, None, e2, edge_params, node_params)
    jax.block_until_ready((x2_out, e2_out))

    assert x2_out.shape == (num_nodes2, feature_dim)
    assert e2_out.shape == (num_edges2, feature_dim)
    assert jnp.allclose(x2_out, _ref_mlp(x2, node_params), atol=1e-5, rtol=1e-5)
    assert jnp.allclose(e2_out, _ref_mlp(e2, edge_params), atol=1e-5, rtol=1e-5)

    # bf16 row-I/O path (halves HBM traffic on v5e/v6e); f32 accumulation
    # inside the kernel, so only input/output rounding differs.
    xb_out, eb_out, _ = graph_encoder_forward(
        x2, None, e2, edge_params, node_params, io_dtype=jnp.bfloat16)
    jax.block_until_ready((xb_out, eb_out))
    assert xb_out.dtype == jnp.bfloat16 and eb_out.dtype == jnp.bfloat16
    assert jnp.allclose(xb_out.astype(jnp.float32),
                        _ref_mlp(x2, node_params), atol=0.1, rtol=0.1)
    assert jnp.allclose(eb_out.astype(jnp.float32),
                        _ref_mlp(e2, edge_params), atol=0.1, rtol=0.1)

    print("KERNEL_OK")
</pallas_src>

<mosaic_0001>
module attributes {stable_mosaic.version = 11 : i64} {
  func.func @_mlp_kernel(%arg0: i32, %arg1: memref<16x8xf32, #tpu.memory_space<vmem>>, %arg2: memref<8x16xf32, #tpu.memory_space<vmem>>, %arg3: memref<1x16xf32, #tpu.memory_space<vmem>>, %arg4: memref<16x32xf32, #tpu.memory_space<vmem>>, %arg5: memref<1x32xf32, #tpu.memory_space<vmem>>, %arg6: memref<32x64xf32, #tpu.memory_space<vmem>>, %arg7: memref<1x64xf32, #tpu.memory_space<vmem>>, %arg8: memref<64x32xf32, #tpu.memory_space<vmem>>, %arg9: memref<1x32xf32, #tpu.memory_space<vmem>>, %arg10: memref<16x32xf32, #tpu.memory_space<vmem>>) attributes {dimension_semantics = [#tpu.dimension_semantics<parallel>], iteration_bounds = array<i64: 2>, scalar_prefetch = 0 : i64, scratch_operands = 0 : i64, tpu.core_type = #tpu.core_type<tc>, window_params = [{transform_indices = @transform_0, window_bounds = array<i64: 16, 8>}, {pipeline_mode = #tpu.pipeline_mode<synchronous>, transform_indices = @transform_1, window_bounds = array<i64: 8, 16>}, {pipeline_mode = #tpu.pipeline_mode<synchronous>, transform_indices = @transform_2, window_bounds = array<i64: 1, 16>}, {pipeline_mode = #tpu.pipeline_mode<synchronous>, transform_indices = @transform_3, window_bounds = array<i64: 16, 32>}, {pipeline_mode = #tpu.pipeline_mode<synchronous>, transform_indices = @transform_4, window_bounds = array<i64: 1, 32>}, {pipeline_mode = #tpu.pipeline_mode<synchronous>, transform_indices = @transform_5, window_bounds = array<i64: 32, 64>}, {pipeline_mode = #tpu.pipeline_mode<synchronous>, transform_indices = @transform_6, window_bounds = array<i64: 1, 64>}, {pipeline_mode = #tpu.pipeline_mode<synchronous>, transform_indices = @transform_7, window_bounds = array<i64: 64, 32>}, {pipeline_mode = #tpu.pipeline_mode<synchronous>, transform_indices = @transform_8, window_bounds = array<i64: 1, 32>}, {transform_indices = @transform_9, window_bounds = array<i64: 16, 32>}]} {
    %c0 = arith.constant 0 : index
    %c0_0 = arith.constant 0 : index
    %0 = vector.load %arg1[%c0, %c0_0] : memref<16x8xf32, #tpu.memory_space<vmem>>, vector<16x8xf32>
    %c0_1 = arith.constant 0 : index
    %c0_2 = arith.constant 0 : index
    %1 = vector.load %arg2[%c0_1, %c0_2] : memref<8x16xf32, #tpu.memory_space<vmem>>, vector<8x16xf32>
    %cst = arith.constant dense<0.000000e+00> : vector<16x16xf32>
    %2 = tpu.matmul %0, %1, %cst {dimension_numbers = #tpu.dot_dimension_numbers<[1], [0], [0], [1], [0, 0, 1, 1], [], []>} : vector<16x8xf32>, vector<8x16xf32>, vector<16x16xf32> -> vector<16x16xf32>
    %c0_3 = arith.constant 0 : index
    %c0_4 = arith.constant 0 : index
    %3 = vector.load %arg3[%c0_3, %c0_4] : memref<1x16xf32, #tpu.memory_space<vmem>>, vector<1x16xf32>
    %4 = vector.broadcast %3 : vector<1x16xf32> to vector<16x16xf32>
    %5 = arith.addf %2, %4 : vector<16x16xf32>
    %cst_5 = arith.constant 0.000000e+00 : f32
    %6 = vector.broadcast %cst_5 : f32 to vector<16x16xf32>
    %7 = arith.maximumf %5, %6 : vector<16x16xf32>
    %c0_6 = arith.constant 0 : index
    %c0_7 = arith.constant 0 : index
    %8 = vector.load %arg4[%c0_6, %c0_7] : memref<16x32xf32, #tpu.memory_space<vmem>>, vector<16x32xf32>
    %cst_8 = arith.constant dense<0.000000e+00> : vector<16x32xf32>
    %9 = tpu.matmul %7, %8, %cst_8 {dimension_numbers = #tpu.dot_dimension_numbers<[1], [0], [0], [1], [0, 0, 1, 1], [], []>} : vector<16x16xf32>, vector<16x32xf32>, vector<16x32xf32> -> vector<16x32xf32>
    %c0_9 = arith.constant 0 : index
    %c0_10 = arith.constant 0 : index
    %10 = vector.load %arg5[%c0_9, %c0_10] : memref<1x32xf32, #tpu.memory_space<vmem>>, vector<1x32xf32>
    %11 = vector.broadcast %10 : vector<1x32xf32> to vector<16x32xf32>
    %12 = arith.addf %9, %11 : vector<16x32xf32>
    %cst_11 = arith.constant 0.000000e+00 : f32
    %13 = vector.broadcast %cst_11 : f32 to vector<16x32xf32>
    %14 = arith.maximumf %12, %13 : vector<16x32xf32>
    %c0_12 = arith.constant 0 : index
    %c0_13 = arith.constant 0 : index
    %15 = vector.load %arg6[%c0_12, %c0_13] : memref<32x64xf32, #tpu.memory_space<vmem>>, vector<32x64xf32>
    %cst_14 = arith.constant dense<0.000000e+00> : vector<16x64xf32>
    %16 = tpu.matmul %14, %15, %cst_14 {dimension_numbers = #tpu.dot_dimension_numbers<[1], [0], [0], [1], [0, 0, 1, 1], [], []>} : vector<16x32xf32>, vector<32x64xf32>, vector<16x64xf32> -> vector<16x64xf32>
    %c0_15 = arith.constant 0 : index
    %c0_16 = arith.constant 0 : index
    %17 = vector.load %arg7[%c0_15, %c0_16] : memref<1x64xf32, #tpu.memory_space<vmem>>, vector<1x64xf32>
    %18 = vector.broadcast %17 : vector<1x64xf32> to vector<16x64xf32>
    %19 = arith.addf %16, %18 : vector<16x64xf32>
    %cst_17 = arith.constant 0.000000e+00 : f32
    %20 = vector.broadcast %cst_17 : f32 to vector<16x64xf32>
    %21 = arith.maximumf %19, %20 : vector<16x64xf32>
    %c0_18 = arith.constant 0 : index
    %c0_19 = arith.constant 0 : index
    %22 = vector.load %arg8[%c0_18, %c0_19] : memref<64x32xf32, #tpu.memory_space<vmem>>, vector<64x32xf32>
    %cst_20 = arith.constant dense<0.000000e+00> : vector<16x32xf32>
    %23 = tpu.matmul %21, %22, %cst_20 {dimension_numbers = #tpu.dot_dimension_numbers<[1], [0], [0], [1], [0, 0, 1, 1], [], []>} : vector<16x64xf32>, vector<64x32xf32>, vector<16x32xf32> -> vector<16x32xf32>
    %c0_21 = arith.constant 0 : index
    %c0_22 = arith.constant 0 : index
    %24 = vector.load %arg9[%c0_21, %c0_22] : memref<1x32xf32, #tpu.memory_space<vmem>>, vector<1x32xf32>
    %25 = vector.broadcast %24 : vector<1x32xf32> to vector<16x32xf32>
    %26 = arith.addf %23, %25 : vector<16x32xf32>
    %c0_23 = arith.constant 0 : index
    %c0_24 = arith.constant 0 : index
    %27 = vector.load %arg10[%c0_23, %c0_24] : memref<16x32xf32, #tpu.memory_space<vmem>>, vector<16x32xf32>
    tpu.vector_store %arg10[%c0_23, %c0_24], %26 {strides = array<i32>} : memref<16x32xf32, #tpu.memory_space<vmem>>, vector<16x32xf32>,
    return
  }
  func.func @transform_0(%arg0: i32) -> (i32, i32) {
    %c0_i32 = arith.constant 0 : i32
    %c0_i32_0 = arith.constant 0 : i32
    return %arg0, %c0_i32 : i32, i32
  }
  func.func @transform_1(%arg0: i32) -> (i32, i32) {
    %c0_i32 = arith.constant 0 : i32
    %c0_i32_0 = arith.constant 0 : i32
    %c0_i32_1 = arith.constant 0 : i32
    return %c0_i32, %c0_i32_0 : i32, i32
  }
  func.func @transform_2(%arg0: i32) -> (i32, i32) {
    %c0_i32 = arith.constant 0 : i32
    %c0_i32_0 = arith.constant 0 : i32
    %c0_i32_1 = arith.constant 0 : i32
    return %c0_i32, %c0_i32_0 : i32, i32
  }
  func.func @transform_3(%arg0: i32) -> (i32, i32) {
    %c0_i32 = arith.constant 0 : i32
    %c0_i32_0 = arith.constant 0 : i32
    %c0_i32_1 = arith.constant 0 : i32
    return %c0_i32, %c0_i32_0 : i32, i32
  }
  func.func @transform_4(%arg0: i32) -> (i32, i32) {
    %c0_i32 = arith.constant 0 : i32
    %c0_i32_0 = arith.constant 0 : i32
    %c0_i32_1 = arith.constant 0 : i32
    return %c0_i32, %c0_i32_0 : i32, i32
  }
  func.func @transform_5(%arg0: i32) -> (i32, i32) {
    %c0_i32 = arith.constant 0 : i32
    %c0_i32_0 = arith.constant 0 : i32
    %c0_i32_1 = arith.constant 0 : i32
    return %c0_i32, %c0_i32_0 : i32, i32
  }
  func.func @transform_6(%arg0: i32) -> (i32, i32) {
    %c0_i32 = arith.constant 0 : i32
    %c0_i32_0 = arith.constant 0 : i32
    %c0_i32_1 = arith.constant 0 : i32
    return %c0_i32, %c0_i32_0 : i32, i32
  }
  func.func @transform_7(%arg0: i32) -> (i32, i32) {
    %c0_i32 = arith.constant 0 : i32
    %c0_i32_0 = arith.constant 0 : i32
    %c0_i32_1 = arith.constant 0 : i32
    return %c0_i32, %c0_i32_0 : i32, i32
  }
  func.func @transform_8(%arg0: i32) -> (i32, i32) {
    %c0_i32 = arith.constant 0 : i32
    %c0_i32_0 = arith.constant 0 : i32
    %c0_i32_1 = arith.constant 0 : i32
    return %c0_i32, %c0_i32_0 : i32, i32
  }
  func.func @transform_9(%arg0: i32) -> (i32, i32) {
    %c0_i32 = arith.constant 0 : i32
    %c0_i32_0 = arith.constant 0 : i32
    return %arg0, %c0_i32 : i32, i32
  }
}

</mosaic_0001>

<bundles_post_ra>
// kernel: tpu_custom_call.1
= control target key start
LH: loop header
LB: loop body
LE: loop exit
PB: predicated region body
PF: predicated region fallthrough
CT: control target
= control target key end

     0   :  { %14 = vsyncpa [#allocation3], 0  ;;  %s1199_s0 = inlined_call_operand.vmem [shape: f32[32,8], index: 0, kind: input, shape index: {}]   ;;  %s1200_s1 = inlined_call_operand.vmem [shape: f32[8,16], index: 1, kind: input, shape index: {}]   ;;  %s1201_s2 = inlined_call_operand.vmem [shape: f32[1,16], index: 2, kind: input, shape index: {}]   ;;  %s1202_s3 = inlined_call_operand.vmem [shape: f32[16,32], index: 3, kind: input, shape index: {}]   ;;  %s1203_s4 = inlined_call_operand.vmem [shape: f32[1,32], index: 4, kind: input, shape index: {}]   ;;  %s1204_s5 = inlined_call_operand.vmem [shape: f32[32,64], index: 5, kind: input, shape index: {}]   ;;  %s1205_s6 = inlined_call_operand.vmem [shape: f32[1,64], index: 6, kind: input, shape index: {}]   ;;  %s1206_s7 = inlined_call_operand.vmem [shape: f32[64,32], index: 7, kind: input, shape index: {}]   ;;  %s1207_s8 = inlined_call_operand.vmem [shape: f32[1,32], index: 8, kind: input, shape index: {}]   ;;  %s1208_s9 = inlined_call_operand.hbm [shape: f32[32,32], index: 9, kind: output, shape index: {}]  }
   0x1   :  { %16 = vsyncpa [#allocation3 + $0x1], 0  ;;  %s1037_s30 = smov 0   ;;  %s1039_s10 = smov 0  }
   0x2   :  { %s1041_s11 = smov 0   ;;  %s1043_s12 = smov 0  }
   0x3 LB: > { %s1058_s13 = sadd.s32 4294967295, %s982_s12   ;;  %s791_s14 = sadd.s32 4294967294, %s982_s12   ;;  %s982_s12 = sphi %s1043_s12, %s1214_s12   ;;  %s978_s11 = sphi %s1041_s11, %s1213_s11   ;;  %s974_s10 = sphi %s1039_s10, %s1212_s10   ;;  %s970_s30 = sphi %s1037_s30, %s1211_s30  }
   0x4   : > { %s1062_s15 = sadd.s32 1, %s982_s12   ;;  %s223_s16 = sadd.s32 1, %s978_s11 }
   0x5   : > { %s220_s17 = ssub.s32 %s982_s12, %s1062_s15  ;;  %p233_p0 = scmp.ne.s32.totalorder %s978_s11, %s974_s10 }
   0x6   : > { %p221_p1 = scmp.eq.s32.totalorder %s220_s17, 0  ;;  %p234_p2 = scmp.eq.s32.totalorder %s1058_s13, 1 }
   0x7   : > { %p239_p3 = scmp.ne.s32.totalorder %s974_s10, %s970_s30  ;;  %p240_p4 = scmp.eq.s32.totalorder %s791_s14, 1 }
   0x8   : > { %s1073_s18 = scalar_select %p221_p1, %s978_s11, %s223_s16  }
   0x9   : > { %p1075_p5 = por %p234_p2, %p233_p0  ;;  %p1079_p6 = por %p240_p4, %p239_p3 }
   0xa   : > { %p794_p7 = scmp.ge.s32.totalorder %s982_s12, 1  ;;  %p291_p8 = scmp.lt.s32.totalorder %s982_s12, 3 }
   0xc   : > { %p292_p9 = pnand %p794_p7, %p291_p8 }
   0xd   : > { %s796_s23 = sshll.u32 (!%p292_p9), %s1058_s13, 1  ;;  %s324_s26 = sand.u32 (!%p292_p9), 1, %s974_s10  }
   0xe   : > { %295 = sbr.rel (%p292_p9) target bundleno = 835 (0x343), region = 56  ;;  %p328_p10 = scmp.lt.s32.totalorder (!%p292_p9), %s796_s23, 3 }
   0xf   : > { %s815_s17 = sshll.u32 (!%p292_p9), %s1058_s13, 8  ;;  %s984_s25 = smov (!%p292_p9), [#allocation2]  }
  0x13   : > { %v336_v0 = vld [vmem:[%s1200_s1] sm:$0xff]  ;;  %s1216_s23 = smov (!%p328_p10, %s796_s23), 3  ;;  %vm344_vm0 = vcmask 64512   ;;  %v429_v3 = vld [vmem:[%s1202_s3 + $0x8] sm:$0xff]  ;;  %vm437_vm1 = vcmask 130048   ;;  %v524_v12 = vld [vmem:[%s1204_s5 + $0x18] sm:$0xff] }
  0x14   : > { %839 = vmatprep.subr.mxu0 %v336_v0  ;;  %s797_s24 = sshll.u32 %s1216_s23, 3  ;;  %v428_v4 = vld [vmem:[%s1202_s3] sm:$0xff]  ;;  %v523_v13 = vld [vmem:[%s1204_s5 + $0x10] sm:$0xff]  ;;  %v522_v14 = vld [vmem:[%s1204_s5 + $0x8] sm:$0xff]  ;;  %vm532_vm2 = vcmask 261120   ;;  %vm631_vm3 = vcmask 523264   ;;  %s1155_s23 = scalar_lea.hbm %s1208_s9, %s815_s17 }
  0x15   : > { %840 = vmatpush3.msra.mxu0 %v336_v0  ;;  %s331_s27 = scalar_lea.vmem %s1199_s0, %s797_s24  ;;  %v798_v5 = vld [vmem:[%s1201_s2] ss:$0 sm:$0xff]  ;;  %v623_v16 = vld [vmem:[%s1206_s7 + $0x38] sm:$0xff]  ;;  %v622_v17 = vld [vmem:[%s1206_s7 + $0x30] sm:$0xff]  ;;  %s1159_s24 = scalar_lea.sflag [#allocation3], %s324_s26 }
  0x16   : > { %v334_v1 = vld [vmem:[%s331_s27] sm:$0xff]  ;;  %v335_v2 = vld [vmem:[%s331_s27 + $0x8] sm:$0xff]  ;;  %844 = vmatprep.subr.mxu0 %v429_v3  ;;  %862 = vmatprep.subr.mxu1 %v623_v16  ;;  %v619_v27 = vld [vmem:[%s1206_s7 + $0x18] sm:$0xff]  ;;  %s795_s27 = sshll.u32 %s324_s26, 4 }
  0x17   : > { %841 = vmatprep.mubr.msk.f32.mxu0 %vm344_vm0, %v334_v1  ;;  %v521_v15 = vld [vmem:[%s1204_s5] sm:$0xff]  ;;  %863 = vmatpush3.msra.mxu1 %v623_v16  ;;  %v621_v18 = vld [vmem:[%s1206_s7 + $0x28] sm:$0xff]  ;;  %v618_v28 = vld [vmem:[%s1206_s7 + $0x10] sm:$0xff]  ;;  %s326_s14 = scalar_lea.vmem [#allocation2], %s795_s27  ;;  %s926_s27 = sshll.u32 %s984_s25, 4  ;;  %s927_s27 = int_to_ptr.vmem [resolvable:$false] %s926_s27 }
  0x18   : > { %842 = vmatmul.mubr.msk.f32.vlgmr.msra.gmra.mxu0 %vm344_vm0, %v335_v2  ;;  %864 = vmatprep.subr.mxu1 %v622_v17  ;;  %v620_v19 = vld [vmem:[%s1206_s7 + $0x20] sm:$0xff]  ;;  %v617_v29 = vld [vmem:[%s1206_s7 + $0x8] sm:$0xff]  ;;  %s729_s16 = sshll.u32 %s326_s14, 4  ;;  %s928_s28 = scalar_lea.vmem %s927_s27, 512  ;;  %s1150_s16 = int_to_ptr.vmem [resolvable:$true] %s729_s16 }
  0x19   : > { %845 = vmatpush3.msra.mxu0 %v429_v3  ;;  %865 = vmatpush3.msra.mxu1 %v622_v17  ;;  %v801_v20 = vld [vmem:[%s1203_s4] ss:$0 sm:$0xff]  ;;  %s922_s13 = scalar_lea.vmem %s1150_s16, 256  ;;  %p929_p0 = scmp.lt.s32.totalorder %s1150_s16, %s927_s27 }
  0x1a   : > { %846 = vmatprep.subr.mxu0 %v428_v4  ;;  %866 = vmatprep.subr.mxu1 %v621_v18  ;;  %v616_v30 = vld [vmem:[%s1206_s7] sm:$0xff]  ;;  %p923_p11 = scmp.ne.s32.totalorder %s1150_s16, %s922_s13  ;;  %p930_p1 = scmp.lt.s32.totalorder %s928_s28, %s922_s13 }
  0x1b   : > { %847 = vmatpush3.msra.mxu0 %v428_v4  ;;  %867 = vmatpush3.msra.mxu1 %v621_v18  ;;  %v804_v31 = vld [vmem:[%s1205_s6] ss:$0 sm:$0xff] }
  0x1c   : > { %851 = vmatprep.subr.mxu0 %v524_v12  ;;  %868 = vmatprep.subr.mxu1 %v620_v19  ;;  %v807_v38 = vld [vmem:[%s1207_s8] ss:$0 sm:$0xff]  ;;  %p924_p12 = pnand %p923_p11, %p1075_p5  ;;  %p931_p2 = por %p930_p1, %p929_p0 }
  0x1d   : > { %869 = vmatpush3.msra.mxu1 %v620_v19 }
  0x1e   : > { %870 = vmatprep.subr.mxu1 %v619_v27  ;;  %p925_p13 = pneg %p924_p12 }
  0x1f   : > { %871 = vmatpush3.msra.mxu1 %v619_v27 }
  0x20   : > { %872 = vmatprep.subr.mxu1 %v618_v28  ;;  %p932_p3 = pnand %p931_p2, %p925_p13 }
  0x21   : > { %873 = vmatpush3.msra.mxu1 %v618_v28 }
  0x22   : > { %874 = vmatprep.subr.mxu1 %v617_v29 }
  0x23   : > { %875 = vmatpush3.msra.mxu1 %v617_v29 }
  0x24   : > { %876 = vmatprep.subr.mxu1 %v616_v30 }
  0x25   : > { %877 = vmatpush3.msra.mxu1 %v616_v30 }
  0xd8   : > { %v843_v6 = vpop.f32.mrf.mxu0 }
  0xd9   : > { %v423_v7 = vadd.f32 %v843_v6, %v798_v5 }
  0xda   : > { %v417_v8 = vpop.f32.mrf.mxu0 }
  0xdb   : > { %v418_v9 = vadd.f32 %v798_v5, %v417_v8  ;;  %v427_v11 = vmax.f32 %v423_v7, 0.0 }
  0xdd   : > { %v426_v10 = vmax.f32 %v418_v9, 0.0 }
  0xdf   : > { %848 = vmatprep.mubr.msk.f32.mxu0 %vm437_vm1, %v426_v10 }
  0xe0   : > { %849 = vmatmul.mubr.msk.f32.vlgmr.msra.gmra.mxu0 %vm437_vm1, %v427_v11 }
  0xe1   : > { %852 = vmatpush3.msra.mxu0 %v524_v12 }
  0xe2   : > { %853 = vmatprep.subr.mxu0 %v523_v13 }
  0xe3   : > { %854 = vmatpush3.msra.mxu0 %v523_v13 }
  0xe4   : > { %855 = vmatprep.subr.mxu0 %v522_v14 }
  0xe5   : > { %856 = vmatpush3.msra.mxu0 %v522_v14 }
  0xe6   : > { %857 = vmatprep.subr.mxu0 %v521_v15 }
  0xe7   : > { %858 = vmatpush3.msra.mxu0 %v521_v15 }
 0x1a0   : > { %v850_v21 = vpop.f32.mrf.mxu0 }
 0x1a1   : > { %v516_v22 = vadd.f32 %v850_v21, %v801_v20 }
 0x1a2   : > { %v510_v23 = vpop.f32.mrf.mxu0 }
 0x1a3   : > { %v511_v24 = vadd.f32 %v801_v20, %v510_v23  ;;  %v520_v26 = vmax.f32 %v516_v22, 0.0 }
 0x1a5   : > { %v519_v25 = vmax.f32 %v511_v24, 0.0 }
 0x1a7   : > { %859 = vmatprep.mubr.msk.f32.mxu0 %vm532_vm2, %v519_v25 }
 0x1a8   : > { %860 = vmatmul.mubr.msk.f32.vlgmr.msra.gmra.mxu0 %vm532_vm2, %v520_v26 }
 0x268   : > { %v861_v32 = vpop.f32.mrf.mxu0 }
 0x269   : > { %v611_v33 = vadd.f32 %v861_v32, %v804_v31 }
 0x26a   : > { %v605_v34 = vpop.f32.mrf.mxu0 }
 0x26b   : > { %v606_v35 = vadd.f32 %v804_v31, %v605_v34  ;;  %v615_v37 = vmax.f32 %v611_v33, 0.0 }
 0x26d   : > { %v614_v36 = vmax.f32 %v606_v35, 0.0 }
 0x26f   : > { %878 = vmatprep.mubr.msk.f32.mxu1 %vm631_vm3, %v614_v36 }
 0x270   : > { %879 = vmatmul.mubr.msk.f32.vlgmr.msra.gmra.mxu1 %vm631_vm3, %v615_v37 }
 0x330   : > { %v880_v39 = vpop.f32.mrf.mxu1 }
 0x331   : > { %v710_v40 = vadd.f32 %v880_v39, %v807_v38 }
 0x332   : > { %v704_v41 = vpop.f32.mrf.mxu1 }
 0x333   : > { %714 = vst.msk [vmem:[%s326_s14 + $0x8] sm:$0xff] %vm532_vm2, %v710_v40  ;;  %v705_v42 = vadd.f32 %v807_v38, %v704_v41 }
 0x335   : > { %713 = vst.msk [vmem:[%s326_s14] sm:$0xff] %vm532_vm2, %v705_v42 }
 0x336   : > { %935 = shalt.err (!%p932_p3)
}
 0x337   : > { %s936_s26 = scalar_lea.hbm %s1155_s23, 256  ;;  %s940_s17 = scalar_lea.hbm %s1208_s9, 512 }
 0x338   : > { %p937_p4 = scmp.ne.s32.totalorder %s1155_s23, %s936_s26  ;;  %p941_p9 = scmp.lt.s32.totalorder %s1155_s23, %s1208_s9 }
 0x339   : > { %p942_p10 = scmp.lt.s32.totalorder %s940_s17, %s936_s26 }
 0x33a   : > { %p938_p7 = pnand %p937_p4, %p1075_p5 }
 0x33b   : > { %p943_p11 = por %p942_p10, %p941_p9 }
 0x33c   : > { %p939_p8 = pneg %p938_p7 }
 0x33e   : > { %p944_p12 = pnand %p943_p11, %p939_p8 }
 0x340   : > { %947 = shalt.err (!%p944_p12)
}
 0x341   : > { %s985_s13 = smov 128   ;;  %s986_s25 = smov 8  }
 0x342   : > { %881 = dma.vmem_to_hbm [thread:$0]  (%p1075_p5), %s1150_s16, 256, %s1155_s23, %s1159_s24, %s985_s13, %s985_s13, %s986_s25  }
 0x343 PF: > { %p887_p13 = scmp.ge.s32.totalorder %s982_s12, 2  ;;  %s744_s27 = sand.u32 1, %s970_s30  }
 0x344   : > { %s745_s28 = scalar_lea.sflag [#allocation3], %s744_s27 }
 0x345   : > { %p884_p0 = pnand %p887_p13, %p1079_p6 }
 0x347   : > { %p885_p1 = pneg %p884_p0 }
 0x349   : > { %965 = dma.done.wait (%p885_p1), %s745_s28, 256  }
 0x34a   : > { %967 = vsyncadd (%p885_p1), %s745_s28, 4294967040  ;;  %p19_p2 = scmp.ge.s32.totalorder %s1062_s15, 4   ;;  %s1211_s30 = smov %s974_s10 }
 0x34b   : > { %s1212_s10 = smov %s978_s11  ;;  %s1213_s11 = smov %s1073_s18 }
 0x34c   : > { %s1214_s12 = smov %s1062_s15  ;;  %21 = sbr.rel (!%p19_p2) target bundleno = 3 (0x3), region = 91 }
 0x351   :  { %750 = vsyncpa [#allocation3], 1 }
 0x352   :  { %752 = vsyncpa [#allocation3 + $0x1], 1 }

</bundles_post_ra>
